<compile_context>
chip_gen: v7x
topology: tpu7x:2x2x1
jax: 0.10.0
libtpu: 0.0.40
codegen_flags: <defaults>
</compile_context>

<pallas_src>
import functools

import jax
import jax.numpy as jnp
from jax.experimental import pallas as pl
from jax.experimental.pallas import tpu as pltpu

LANES = 128
_SUBLANES = {4: 8, 2: 16, 1: 32}   # native sublane packing per itemsize


def _detect_tpu(num_cores_override=None):
    """Best-effort (num_core_slices, is_v7x) from the local device kind."""
    kind = ""
    try:
        kind = (jax.devices()[0].device_kind or "").lower()
    except Exception:
        pass
    is_v7 = "v7" in kind
    if num_cores_override is not None:
        cores = max(1, int(num_cores_override))
    else:
        cores = 2 if (is_v7 or "v4" in kind or "v5p" in kind) else 1
    return cores, is_v7


def _masked_hits_jax(pred, gt, threshold):
    """Plain-JAX hit/valid counts (reference formula). Used for tiny tails."""
    gt = gt.astype(jnp.float32)
    pred = pred.astype(jnp.float32)
    valid = gt != 0.0
    gt_s = jnp.where(valid, gt, 1.0)
    pr_s = jnp.where(valid, pred, 1.0)
    hit = jnp.logical_and(jnp.maximum(pr_s / gt_s, gt_s / pr_s) < threshold, valid)
    return hit.astype(jnp.float32).sum(), valid.astype(jnp.float32).sum()


def _masked_thr_acc_kernel(pred_ref, gt_ref, hit_out, valid_out, *,
                           threshold, inv_threshold, row_tile, steps_per_core,
                           rows_total, emit_masked_path):
    c = pl.program_id(0)          # core slice (parallel axis)
    t = pl.program_id(1)          # reduction step (arbitrary axis)

    @pl.when(t == 0)
    def _():
        hit_out[...] = jnp.zeros_like(hit_out)
        valid_out[...] = jnp.zeros_like(valid_out)

    def accumulate(row_bound=None):
        gt = gt_ref[...].astype(jnp.float32)
        pred = pred_ref[...].astype(jnp.float32)
        valid = gt != 0.0
        if row_bound is not None:
            row_ids = jax.lax.broadcasted_iota(jnp.int32, (row_tile, LANES), 0)
            valid = jnp.logical_and(valid, row_ids < row_bound)
        # Raw divide: invalid lanes may produce inf/NaN, which compare False
        # below and are ANDed with `valid`, so they never contribute.
        r = pred / gt
        # max(p/g, g/p) < T  <=>  (1/T < p/g < T)  or  p/g < 0   (for T > 1)
        hit = jnp.logical_and(r < threshold, r > inv_threshold)
        hit = jnp.logical_or(hit, r < 0.0)
        hit = jnp.logical_and(hit, valid)
        # Fold the row tile down to (8, LANES) with VPU adds only; the single
        # cross-lane XLU reduction happens once, in the wrapper.
        hit_p = hit.astype(jnp.float32).reshape(row_tile // 8, 8, LANES).sum(axis=0)
        val_p = valid.astype(jnp.float32).reshape(row_tile // 8, 8, LANES).sum(axis=0)
        hit_out[...] += hit_p[None]
        valid_out[...] += val_p[None]

    if emit_masked_path:
        blk = c * steps_per_core + t               # logical (unclamped) block id
        straddles = (blk + 1) * row_tile > rows_total

        @pl.when(jnp.logical_not(straddles))
        def _():
            accumulate()

        @pl.when(straddles)
        def _():
            # Straddling / over-provisioned block: mask by the number of
            # in-range rows. Non-positive bound -> everything masked out.
            accumulate(rows_total - blk * row_tile)
    else:
        accumulate()


def masked_threshold_accuracy(pred, gt, threshold=1.25, row_tile=None,
                              num_cores=None):
    assert pred.shape == gt.shape
    n = int(pred.size)
    pred_f = pred.reshape(-1)
    gt_f = gt.reshape(-1)

    itemsize = jnp.dtype(pred_f.dtype).itemsize
    sub = _SUBLANES.get(itemsize, 8)
    cores_avail, is_v7 = _detect_tpu(num_cores)

    n_main = (n // LANES) * LANES
    rows = n_main // LANES

    if rows < sub:
        # Too small for even one aligned tile: plain JAX handles everything.
        hit, valid = _masked_hits_jax(pred_f, gt_f, threshold)
        return hit / valid

    # Ragged-by-lane tail (< 128 elements): tiny plain-JAX reduction instead
    # of a full-array jnp.pad copy.
    if n_main < n:
        tail_hit, tail_valid = _masked_hits_jax(pred_f[n_main:], gt_f[n_main:],
                                                threshold)
        pred_main = pred_f[:n_main]
        gt_main = gt_f[:n_main]
    else:
        tail_hit = jnp.float32(0.0)
        tail_valid = jnp.float32(0.0)
        pred_main = pred_f
        gt_main = gt_f

    pred2d = pred_main.reshape(rows, LANES)   # free reshape (no pad, no copy)
    gt2d = gt_main.reshape(rows, LANES)

    # Row tile: ~2 MiB/input block (4 MiB on v7x), multiple of the sublane
    # packing, capped at the row count.
    if row_tile is None:
        target_block_bytes = (4 if is_v7 else 2) * 1024 * 1024
        row_tile = target_block_bytes // (LANES * itemsize)
    rt = max(sub, (min(int(row_tile), rows) // sub) * sub)

    blocks = pl.cdiv(rows, rt)
    cores = max(1, min(cores_avail, blocks))
    steps = pl.cdiv(blocks, cores)
    # Masking is only emitted (and then runtime-gated to the straddling block)
    # when the grid covers more rows than the data has.
    emit_masked_path = cores * steps * rt > rows

    def in_map(c, t):
        # Clamp: over-provisioned steps re-read the last block (fully masked).
        return (jnp.minimum(c * steps + t, blocks - 1), 0)

    def out_map(c, t):
        return (c, 0, 0)

    kernel = functools.partial(
        _masked_thr_acc_kernel,
        threshold=float(threshold),
        inv_threshold=1.0 / float(threshold),
        row_tile=rt,
        steps_per_core=steps,
        rows_total=rows,
        emit_masked_path=emit_masked_path)

    hit_parts, valid_parts = pl.pallas_call(
        kernel,
        out_shape=(jax.ShapeDtypeStruct((cores, 8, LANES), jnp.float32),
                   jax.ShapeDtypeStruct((cores, 8, LANES), jnp.float32)),
        grid_spec=pltpu.PrefetchScalarGridSpec(
            num_scalar_prefetch=0,
            grid=(cores, steps),
            in_specs=[
                pl.BlockSpec((rt, LANES), in_map),
                pl.BlockSpec((rt, LANES), in_map),
            ],
            out_specs=[
                pl.BlockSpec((1, 8, LANES), out_map),
                pl.BlockSpec((1, 8, LANES), out_map),
            ],
        ),
        # TODO(synk): if v7x profiling shows one TensorCore idle, switch the
        # first grid axis to pltpu.CORE_PARALLEL.
        compiler_params=pltpu.CompilerParams(
            dimension_semantics=("parallel", "arbitrary"),
            vmem_limit_bytes=32 * 1024 * 1024),
        cost_estimate=pl.CostEstimate(
            flops=8 * n_main,
            transcendentals=n_main,
            bytes_accessed=2 * n_main * itemsize + 2 * cores * 8 * LANES * 4),
    )(pred2d, gt2d)

    total_hit = hit_parts.sum() + tail_hit
    total_valid = valid_parts.sum() + tail_valid
    # Plain divide, like torch: nan/inf when there are no valid points.
    return total_hit / total_valid


def masked_threshold_accuracy_ref(pred, gt, threshold=1.25):
    hit, valid = _masked_hits_jax(pred, gt, threshold)
    return hit / valid


if __name__ == "__main__":
    key = jax.random.PRNGKey(0)
    k1, k2, k3 = jax.random.split(key, 3)

    # depth maps: NCHW, batch=2, channels=4, spatial=16x16
    shape = (2, 4, 16, 16)
    gt = jax.random.uniform(k1, shape, jnp.float32, minval=0.1, maxval=10.0)
    invalid = jax.random.uniform(k2, shape) < 0.3        # ~30% invalid (gt==0)
    gt = jnp.where(invalid, 0.0, gt)
    pred = gt * jnp.exp(0.2 * jax.random.normal(k3, shape)) + 0.05

    out = masked_threshold_accuracy(pred, gt, threshold=1.25)
    jax.block_until_ready(out)
    ref = masked_threshold_accuracy_ref(pred, gt, threshold=1.25)
    assert jnp.allclose(out, ref, atol=1e-6, rtol=1e-6), (out, ref)

    # ragged shape + tiny tile: exercises the lane tail (plain-JAX path), the
    # gated straddling-block mask and the multi-step grid.
    shape2 = (2, 1, 37, 53)
    gt2 = jax.random.uniform(k1, shape2, jnp.float32, minval=0.1, maxval=10.0)
    gt2 = jnp.where(jax.random.uniform(k2, shape2) < 0.3, 0.0, gt2)
    pred2 = gt2 * jnp.exp(0.2 * jax.random.normal(k3, shape2)) + 0.05
    out2 = masked_threshold_accuracy(pred2, gt2, threshold=1.25, row_tile=8)
    jax.block_until_ready(out2)
    ref2 = masked_threshold_accuracy_ref(pred2, gt2, threshold=1.25)
    assert jnp.allclose(out2, ref2, atol=1e-6, rtol=1e-6), (out2, ref2)

    # bf16 inputs: exercises the 16-row sublane packing and in-kernel f32 cast.
    gt3 = gt.astype(jnp.bfloat16)
    pred3 = pred.astype(jnp.bfloat16)
    out3 = masked_threshold_accuracy(pred3, gt3, threshold=1.25)
    jax.block_until_ready(out3)
    ref3 = masked_threshold_accuracy_ref(pred3, gt3, threshold=1.25)
    assert jnp.allclose(out3, ref3, atol=1e-6, rtol=1e-6), (out3, ref3)

    print("KERNEL_OK")
</pallas_src>

<mosaic_0001>
module attributes {stable_mosaic.version = 11 : i64} {
  func.func @_masked_thr_acc_kernel(%arg0: i32, %arg1: i32, %arg2: memref<16x128xf32, #tpu.memory_space<vmem>>, %arg3: memref<16x128xf32, #tpu.memory_space<vmem>>, %arg4: memref<1x8x128xf32, #tpu.memory_space<vmem>>, %arg5: memref<1x8x128xf32, #tpu.memory_space<vmem>>) attributes {dimension_semantics = [#tpu.dimension_semantics<parallel>, #tpu.dimension_semantics<arbitrary>], iteration_bounds = array<i64: 1, 1>, scalar_prefetch = 0 : i64, scratch_operands = 0 : i64, tpu.core_type = #tpu.core_type<tc>, window_params = [{transform_indices = @transform_0, window_bounds = array<i64: 16, 128>}, {transform_indices = @transform_1, window_bounds = array<i64: 16, 128>}, {transform_indices = @transform_2, window_bounds = array<i64: 1, 8, 128>}, {transform_indices = @transform_3, window_bounds = array<i64: 1, 8, 128>}]} {
    %c0_i32 = arith.constant 0 : i32
    %0 = arith.cmpi eq, %arg1, %c0_i32 : i32
    %1 = arith.extui %0 : i1 to i32
    %c0_i32_0 = arith.constant 0 : i32
    %2 = arith.cmpi ne, %1, %c0_i32_0 : i32
    scf.if %2 {
      %cst_21 = arith.constant 0.000000e+00 : f32
      %33 = vector.broadcast %cst_21 : f32 to vector<1x8x128xf32>
      %c0_22 = arith.constant 0 : index
      %c0_23 = arith.constant 0 : index
      %c0_24 = arith.constant 0 : index
      %34 = vector.load %arg4[%c0_22, %c0_23, %c0_24] : memref<1x8x128xf32, #tpu.memory_space<vmem>>, vector<1x8x128xf32>
      tpu.vector_store %arg4[%c0_22, %c0_23, %c0_24], %33 {strides = array<i32>} : memref<1x8x128xf32, #tpu.memory_space<vmem>>, vector<1x8x128xf32>,
      %cst_25 = arith.constant 0.000000e+00 : f32
      %35 = vector.broadcast %cst_25 : f32 to vector<1x8x128xf32>
      %c0_26 = arith.constant 0 : index
      %c0_27 = arith.constant 0 : index
      %c0_28 = arith.constant 0 : index
      %36 = vector.load %arg5[%c0_26, %c0_27, %c0_28] : memref<1x8x128xf32, #tpu.memory_space<vmem>>, vector<1x8x128xf32>
      tpu.vector_store %arg5[%c0_26, %c0_27, %c0_28], %35 {strides = array<i32>} : memref<1x8x128xf32, #tpu.memory_space<vmem>>, vector<1x8x128xf32>,
    } else {
    }
    %c0 = arith.constant 0 : index
    %c0_1 = arith.constant 0 : index
    %3 = vector.load %arg3[%c0, %c0_1] : memref<16x128xf32, #tpu.memory_space<vmem>>, vector<16x128xf32>
    %c0_2 = arith.constant 0 : index
    %c0_3 = arith.constant 0 : index
    %4 = vector.load %arg2[%c0_2, %c0_3] : memref<16x128xf32, #tpu.memory_space<vmem>>, vector<16x128xf32>
    %cst = arith.constant 0.000000e+00 : f32
    %5 = vector.broadcast %cst : f32 to vector<16x128xf32>
    %6 = arith.cmpf one, %3, %5 : vector<16x128xf32>
    %7 = arith.divf %4, %3 : vector<16x128xf32>
    %cst_4 = arith.constant 1.250000e+00 : f32
    %8 = vector.broadcast %cst_4 : f32 to vector<16x128xf32>
    %9 = arith.cmpf olt, %7, %8 : vector<16x128xf32>
    %cst_5 = arith.constant 8.000000e-01 : f32
    %10 = vector.broadcast %cst_5 : f32 to vector<16x128xf32>
    %11 = arith.cmpf ogt, %7, %10 : vector<16x128xf32>
    %12 = arith.andi %9, %11 : vector<16x128xi1>
    %cst_6 = arith.constant 0.000000e+00 : f32
    %13 = vector.broadcast %cst_6 : f32 to vector<16x128xf32>
    %14 = arith.cmpf olt, %7, %13 : vector<16x128xf32>
    %15 = arith.ori %12, %14 : vector<16x128xi1>
    %16 = arith.andi %15, %6 : vector<16x128xi1>
    %17 = arith.extui %16 : vector<16x128xi1> to vector<16x128xi32>
    %18 = arith.sitofp %17 : vector<16x128xi32> to vector<16x128xf32>
    %19 = vector.shape_cast %18 : vector<16x128xf32> to vector<2x8x128xf32>
    %cst_7 = arith.constant dense<0.000000e+00> : vector<8x128xf32>
    %20 = vector.multi_reduction <add>, %19, %cst_7 [0] : vector<2x8x128xf32> to vector<8x128xf32>
    %21 = arith.extui %6 : vector<16x128xi1> to vector<16x128xi32>
    %22 = arith.sitofp %21 : vector<16x128xi32> to vector<16x128xf32>
    %23 = vector.shape_cast %22 : vector<16x128xf32> to vector<2x8x128xf32>
    %cst_8 = arith.constant dense<0.000000e+00> : vector<8x128xf32>
    %24 = vector.multi_reduction <add>, %23, %cst_8 [0] : vector<2x8x128xf32> to vector<8x128xf32>
    %c0_9 = arith.constant 0 : index
    %c0_10 = arith.constant 0 : index
    %c0_11 = arith.constant 0 : index
    %25 = vector.load %arg4[%c0_9, %c0_10, %c0_11] : memref<1x8x128xf32, #tpu.memory_space<vmem>>, vector<1x8x128xf32>
    %26 = vector.shape_cast %20 : vector<8x128xf32> to vector<1x8x128xf32>
    %27 = arith.addf %25, %26 : vector<1x8x128xf32>
    %c0_12 = arith.constant 0 : index
    %c0_13 = arith.constant 0 : index
    %c0_14 = arith.constant 0 : index
    %28 = vector.load %arg4[%c0_12, %c0_13, %c0_14] : memref<1x8x128xf32, #tpu.memory_space<vmem>>, vector<1x8x128xf32>
    tpu.vector_store %arg4[%c0_12, %c0_13, %c0_14], %27 {strides = array<i32>} : memref<1x8x128xf32, #tpu.memory_space<vmem>>, vector<1x8x128xf32>,
    %c0_15 = arith.constant 0 : index
    %c0_16 = arith.constant 0 : index
    %c0_17 = arith.constant 0 : index
    %29 = vector.load %arg5[%c0_15, %c0_16, %c0_17] : memref<1x8x128xf32, #tpu.memory_space<vmem>>, vector<1x8x128xf32>
    %30 = vector.shape_cast %24 : vector<8x128xf32> to vector<1x8x128xf32>
    %31 = arith.addf %29, %30 : vector<1x8x128xf32>
    %c0_18 = arith.constant 0 : index
    %c0_19 = arith.constant 0 : index
    %c0_20 = arith.constant 0 : index
    %32 = vector.load %arg5[%c0_18, %c0_19, %c0_20] : memref<1x8x128xf32, #tpu.memory_space<vmem>>, vector<1x8x128xf32>
    tpu.vector_store %arg5[%c0_18, %c0_19, %c0_20], %31 {strides = array<i32>} : memref<1x8x128xf32, #tpu.memory_space<vmem>>, vector<1x8x128xf32>,
    return
  }
  func.func @transform_0(%arg0: i32, %arg1: i32) -> (i32, i32) {
    %c1_i32 = arith.constant 1 : i32
    %0 = arith.muli %arg0, %c1_i32 : i32
    %1 = arith.addi %0, %arg1 : i32
    %c0_i32 = arith.constant 0 : i32
    %2 = arith.minsi %1, %c0_i32 : i32
    %c0_i32_0 = arith.constant 0 : i32
    %c0_i32_1 = arith.constant 0 : i32
    return %2, %c0_i32_0 : i32, i32
  }
  func.func @transform_1(%arg0: i32, %arg1: i32) -> (i32, i32) {
    %c1_i32 = arith.constant 1 : i32
    %0 = arith.muli %arg0, %c1_i32 : i32
    %1 = arith.addi %0, %arg1 : i32
    %c0_i32 = arith.constant 0 : i32
    %2 = arith.minsi %1, %c0_i32 : i32
    %c0_i32_0 = arith.constant 0 : i32
    %c0_i32_1 = arith.constant 0 : i32
    return %2, %c0_i32_0 : i32, i32
  }
  func.func @transform_2(%arg0: i32, %arg1: i32) -> (i32, i32, i32) {
    %c0_i32 = arith.constant 0 : i32
    %c0_i32_0 = arith.constant 0 : i32
    %c0_i32_1 = arith.constant 0 : i32
    return %arg0, %c0_i32, %c0_i32_0 : i32, i32, i32
  }
  func.func @transform_3(%arg0: i32, %arg1: i32) -> (i32, i32, i32) {
    %c0_i32 = arith.constant 0 : i32
    %c0_i32_0 = arith.constant 0 : i32
    %c0_i32_1 = arith.constant 0 : i32
    return %arg0, %c0_i32, %c0_i32_0 : i32, i32, i32
  }
}

</mosaic_0001>

<bundles_post_ra>
// kernel: tpu_custom_call.1
= control target key start
LH: loop header
LB: loop body
LE: loop exit
PB: predicated region body
PF: predicated region fallthrough
CT: control target
= control target key end

     0   :  { %9 = vsyncpa [#allocation3], 0  ;;  %s331_s0 = inlined_call_operand.hbm [shape: f32[16,128], index: 0, kind: input, shape index: {}]   ;;  %s332_s1 = inlined_call_operand.hbm [shape: f32[16,128], index: 1, kind: input, shape index: {}]   ;;  %s333_s2 = inlined_call_operand.hbm [shape: f32[1,8,128], index: 2, kind: output, shape index: {0}]   ;;  %s334_s3 = inlined_call_operand.hbm [shape: f32[1,8,128], index: 3, kind: output, shape index: {1}]  }
   0x1   :  { %10 = vsyncpa [#allocation6], 0 }
   0x2   :  { %11 = vsyncpa [#allocation4], 0 }
   0x3   :  { %12 = vsyncpa [#allocation9], 0  ;;  %s252_s12 = smov [#allocation2]   ;;  %s156_s16 = scalar_lea.hbm %s331_s0, 256 }
   0x4   :  { %s24_s13 = sshll.u32 %s252_s12, 4  ;;  %p157_p0 = scmp.ne.s32.totalorder %s331_s0, %s156_s16  ;;  %s25_s13 = int_to_ptr.vmem [resolvable:$true] %s24_s13 }
   0x5   :  { %p160_p1 = scmp.lt.u32.totalorder %s156_s16, %s331_s0 }
   0x7   :  { %p162_p2 = pnand %p160_p1, %p157_p0 }
   0x9   :  { %165 = shalt.err (!%p162_p2)
}
   0xa   :  { %s166_s21 = scalar_lea.vmem %s25_s13, 256  ;;  %p171_p4 = scmp.lt.s32.totalorder %s25_s13, %s25_s13 }
   0xb   :  { %p167_p3 = scmp.ne.s32.totalorder %s25_s13, %s166_s21  ;;  %p172_p5 = scmp.lt.s32.totalorder %s166_s21, %s166_s21 }
   0xd   :  { %p173_p6 = por %p172_p5, %p171_p4 }
   0xf   :  { %p174_p7 = pnand %p173_p6, %p167_p3 }
  0x11   :  { %177 = shalt.err (!%p174_p7)
}
  0x12   :  { %s253_s22 = smov 128   ;;  %s254_s23 = smov 8  }
  0x13   :  { %30 = dma.hbm_to_vmem [thread:$0]  %s331_s0, 256, %s25_s13, [#allocation3], %s253_s22, %s253_s22, %s254_s23  }
  0x14   :  { %s255_s26 = smov [#allocation5]   ;;  %s178_s30 = scalar_lea.hbm %s332_s1, 256 }
  0x15   :  { %s42_s27 = sshll.u32 %s255_s26, 4  ;;  %p179_p8 = scmp.ne.s32.totalorder %s332_s1, %s178_s30  ;;  %s43_s27 = int_to_ptr.vmem [resolvable:$true] %s42_s27 }
  0x16   :  { %p182_p9 = scmp.lt.u32.totalorder %s178_s30, %s332_s1 }
  0x18   :  { %p184_p10 = pnand %p182_p9, %p179_p8 }
  0x1a   :  { %187 = shalt.err (!%p184_p10)
}
  0x1b   :  { %s188_s8 = scalar_lea.vmem %s43_s27, 256  ;;  %p193_p12 = scmp.lt.s32.totalorder %s43_s27, %s43_s27 }
  0x1c   :  { %p189_p11 = scmp.ne.s32.totalorder %s43_s27, %s188_s8  ;;  %p194_p13 = scmp.lt.s32.totalorder %s188_s8, %s188_s8 }
  0x1e   :  { %p195_p0 = por %p194_p13, %p193_p12 }
  0x20   :  { %p196_p1 = pnand %p195_p0, %p189_p11 }
  0x22   :  { %199 = shalt.err (!%p196_p1)
}
  0x23   :  { %48 = dma.hbm_to_vmem [thread:$0]  %s332_s1, 256, %s43_s27, [#allocation6], %s253_s22, %s253_s22, %s254_s23  }
  0x24   :  { %244 = dma.done.wait [#allocation3], 256  }
  0x25   :  { %245 = vsyncadd [#allocation3], 4294967040 }
  0x26   :  { %246 = dma.done.wait [#allocation6], 256  }
  0x27   :  { %247 = vsyncadd [#allocation6], 4294967040  ;;  %v69_v0 = vld [vmem:[#allocation5] sm:$0xff]  ;;  %v70_v1 = vld [vmem:[#allocation5 + $0x8] sm:$0xff]  ;;  %v256_v2 = vmov 0.0   ;;  %s257_s10 = smov [#allocation8]  }
  0x28   :  { %vm73_vm0 = vcmp.ne.f32.partialorder %v69_v0, 0.0  ;;  %vm74_vm1 = vcmp.ne.f32.partialorder %v70_v1, 0.0  ;;  %152 = vrcp.f32 %v69_v0  ;;  %s123_s11 = sshll.u32 %s257_s10, 4  ;;  %s124_s11 = int_to_ptr.vmem [resolvable:$true] %s123_s11 }
  0x29   :  { %154 = vrcp.f32 %v70_v1  ;;  %v143_v3 = vsel %vm73_vm0, 1.0, %v256_v2  ;;  %v144_v4 = vsel %vm74_vm1, 1.0, %v256_v2  ;;  %s200_s1 = scalar_lea.vmem %s124_s11, 128  ;;  %p205_p3 = scmp.lt.s32.totalorder %s124_s11, %s124_s11 }
  0x2a   :  { %v100_v5 = vadd.f32 %v144_v4, %v143_v3  ;;  %p201_p2 = scmp.ne.s32.totalorder %s124_s11, %s200_s1  ;;  %p206_p4 = scmp.lt.s32.totalorder %s200_s1, %s200_s1 }
  0x2c   :  { %106 = vst [vmem:[#allocation8] sm:$0xff] %v100_v5  ;;  %p207_p5 = por %p206_p4, %p205_p3 }
  0x2e   :  { %p208_p6 = pnand %p207_p5, %p201_p2 }
  0x30   :  { %211 = shalt.err (!%p208_p6)
}
  0x31   :  { %s212_s14 = scalar_lea.hbm %s334_s3, 128 }
  0x32   :  { %p213_p7 = scmp.ne.s32.totalorder %s334_s3, %s212_s14  ;;  %p216_p8 = scmp.lt.u32.totalorder %s212_s14, %s334_s3 }
  0x34   :  { %p218_p9 = pnand %p216_p8, %p213_p7 }
  0x36   :  { %221 = shalt.err (!%p218_p9)
}
  0x37   :  { %126 = dma.vmem_to_hbm [thread:$0]  %s124_s11, 128, %s334_s3, [#allocation9]   ;;  %v71_v6 = vld [vmem:[#allocation2] sm:$0xff]  ;;  %v72_v7 = vld [vmem:[#allocation2 + $0x8] sm:$0xff]  ;;  %v153_v8 = vpop.eup %152 }
  0x38   :  { %v155_v9 = vpop.eup %154  ;;  %v76_v10 = vmul.f32 %v153_v8, %v71_v6  ;;  %s258_s3 = smov [#allocation7]  }
  0x39   :  { %v78_v11 = vmul.f32 %v155_v9, %v72_v7  ;;  %s113_s21 = sshll.u32 %s258_s3, 4  ;;  %s114_s21 = int_to_ptr.vmem [resolvable:$true] %s113_s21 }
  0x3a   :  { %vm79_vm2 = vcmp.lt.f32.partialorder %v76_v10, 1.25  ;;  %vm81_vm3 = vcmp.gt.f32.partialorder %v76_v10, 0.8  ;;  %vm85_vm4 = vcmp.lt.f32.partialorder %v76_v10, 0.0  ;;  %s222_s22 = scalar_lea.vmem %s114_s21, 128  ;;  %p227_p11 = scmp.lt.s32.totalorder %s114_s21, %s114_s21 }
  0x3b   :  { %vm80_vm5 = vcmp.lt.f32.partialorder %v78_v11, 1.25  ;;  %vm82_vm6 = vcmp.gt.f32.partialorder %v78_v11, 0.8  ;;  %vm83_vm7 = vmand %vm79_vm2, %vm81_vm3  ;;  %vm86_vm8 = vcmp.lt.f32.partialorder %v78_v11, 0.0  ;;  %p223_p10 = scmp.ne.s32.totalorder %s114_s21, %s222_s22  ;;  %p228_p12 = scmp.lt.s32.totalorder %s222_s22, %s222_s22 }
  0x3c   :  { %vm84_vm9 = vmand %vm80_vm5, %vm82_vm6 }
  0x3d   :  { %vm87_vm10 = vmor %vm83_vm7, %vm85_vm4  ;;  %p229_p13 = por %p228_p12, %p227_p11 }
  0x3e   :  { %vm88_vm11 = vmor %vm84_vm9, %vm86_vm8 }
  0x3f   :  { %vm89_vm12 = vmand %vm87_vm10, %vm73_vm0  ;;  %p230_p0 = pnand %p229_p13, %p223_p10 }
  0x40   :  { %vm90_vm13 = vmand %vm88_vm11, %vm74_vm1  ;;  %v141_v12 = vsel %vm89_vm12, 1.0, %v256_v2 }
  0x41   :  { %v142_v13 = vsel %vm90_vm13, 1.0, %v256_v2 }
  0x42   :  { %v95_v14 = vadd.f32 %v142_v13, %v141_v12 }
  0x44   :  { %103 = vst [vmem:[#allocation7] sm:$0xff] %v95_v14 }
  0x45   :  { %233 = shalt.err (!%p230_p0)
}
  0x46   :  { %s234_s25 = scalar_lea.hbm %s333_s2, 128 }
  0x47   :  { %p235_p1 = scmp.ne.s32.totalorder %s333_s2, %s234_s25  ;;  %p238_p2 = scmp.lt.u32.totalorder %s234_s25, %s333_s2 }
  0x49   :  { %p240_p3 = pnand %p238_p2, %p235_p1 }
  0x4b   :  { %243 = shalt.err (!%p240_p3)
}
  0x4c   :  { %116 = dma.vmem_to_hbm [thread:$0]  %s114_s21, 128, %s333_s2, [#allocation4]  }
  0x4d   :  { %248 = dma.done.wait [#allocation4], 128  }
  0x4e   :  { %249 = vsyncadd [#allocation4], 4294967168 }
  0x4f   :  { %250 = dma.done.wait [#allocation9], 128  }
  0x50   :  { %251 = vsyncadd [#allocation9], 4294967168 }
  0x51   :  { %133 = vsyncpa [#allocation3], 1 }
  0x52   :  { %134 = vsyncpa [#allocation6], 1 }
  0x53   :  { %135 = vsyncpa [#allocation4], 1 }
  0x54   :  { %136 = vsyncpa [#allocation9], 1 }

</bundles_post_ra>
